<compile_context>
chip_gen: v5e
topology: v5e:2x2
jax: 0.10.0
libtpu: 0.0.40
codegen_flags: <defaults>
</compile_context>

<pallas_src>
import math
from functools import partial

import jax
import jax.numpy as jnp
from jax.experimental import pallas as pl
from jax.experimental.pallas import tpu as pltpu  # noqa: F401  (TPU backend)


# ---------------------------------------------------------------------------
# Config (small, deterministic)
# ---------------------------------------------------------------------------
BATCH = 2
SEQ = 8
HIDDEN = 32
NUM_HEADS = 4
HEAD_DIM = HIDDEN // NUM_HEADS
LATENT = 16
OUT_PAD = 128            # lane-dense output slab width (multiple of 128)


# ---------------------------------------------------------------------------
# Kernel: full MLA forward for the whole (batch*seq) in one invocation
# ---------------------------------------------------------------------------
def mla_kernel(x_ref,                       # (B*S, H)
               w_qlat_ref, b_qlat_ref,      # (H, H+L), (1, H+L)   [Wq | Wkv]
               w_kv_ref, b_kv_ref,          # (L, 2H),  (1, 2H)    [Wk | Wv]
               wo_ref, bo_ref,              # (H, OUT_PAD), (1, OUT_PAD)
               out_ref,                     # (B*S, OUT_PAD)
               *, batch, seq, hidden, latent, num_heads, head_dim):
    B, S, H, L = batch, seq, hidden, latent

    x = x_ref[...]                                                    # (BS, H)

    # --- fused q / latent projection: one MXU matmul instead of two ---
    qlat = jnp.dot(x, w_qlat_ref[...],
                   preferred_element_type=jnp.float32) + b_qlat_ref[...]   # (BS, H+L)
    lat = qlat[:, H:H + L]                                            # (BS, L)

    # --- fused k / v projection: one MXU matmul instead of two ---
    kv = jnp.dot(lat, w_kv_ref[...],
                 preferred_element_type=jnp.float32) + b_kv_ref[...]       # (BS, 2H)

    # 3-D views so attention stays batched per batch element (no cross-batch mix)
    q3 = qlat[:, :H].reshape(B, S, H)                                 # (B, S, H)
    k3 = kv[:, :H].reshape(B, S, H)
    v3 = kv[:, H:2 * H].reshape(B, S, H)

    scale = 1.0 / math.sqrt(head_dim)

    # --- per-head attention; einsum contracts the LAST dim of both operands,
    #     so no explicit transpose is materialized (batched over B inside) ---
    ctx_heads = []
    for h in range(num_heads):
        lo = h * head_dim
        hi = lo + head_dim
        qh = q3[:, :, lo:hi]                                          # (B, S, hd)
        kh = k3[:, :, lo:hi]
        vh = v3[:, :, lo:hi]

        s = jnp.einsum('bqd,bkd->bqk', qh, kh,
                       preferred_element_type=jnp.float32) * scale    # (B, S, S)
        m = jnp.max(s, axis=-1, keepdims=True)
        p = jnp.exp(s - m)
        probs = p * pl.reciprocal(jnp.sum(p, axis=-1, keepdims=True),
                                  approx=False)
        ctx_heads.append(
            jnp.einsum('bqk,bkd->bqd', probs, vh,
                       preferred_element_type=jnp.float32))           # (B, S, hd)

    # concat over heads == torch transpose(1,2).reshape
    context = jnp.concatenate(ctx_heads, axis=-1).reshape(B * S, H)   # (BS, H)

    # --- output projection into a lane-dense (128-wide) slab ---
    out = jnp.dot(context, wo_ref[...],
                  preferred_element_type=jnp.float32) + bo_ref[...]   # (BS, OUT_PAD)
    out_ref[...] = out.astype(out_ref.dtype)


# ---------------------------------------------------------------------------
# Wrapper: fuse/pad weights (layout plumbing only), single pallas_call
# ---------------------------------------------------------------------------
def mla_forward(hidden_states, params, *, num_heads=NUM_HEADS, head_dim=HEAD_DIM):
    B, S, H = hidden_states.shape
    L = params["wkv"].shape[1]

    # Fused projection weights (would be pre-fused at init in a real model).
    w_qlat = jnp.concatenate([params["wq"], params["wkv"]], axis=1)   # (H, H+L)
    b_qlat = jnp.concatenate([params["bq"], params["bkv"]], axis=1)   # (1, H+L)
    w_kv = jnp.concatenate([params["wk"], params["wv"]], axis=1)      # (L, 2H)
    b_kv = jnp.concatenate([params["bk"], params["bv"]], axis=1)      # (1, 2H)

    # Zero-pad the output projection to 128 lanes -> unmasked vector stores.
    wo_pad = jnp.pad(params["wo"], ((0, 0), (0, OUT_PAD - H)))
    bo_pad = jnp.pad(params["bo"], ((0, 0), (0, OUT_PAD - H)))

    x2 = hidden_states.reshape(B * S, H)

    kernel = partial(mla_kernel, batch=B, seq=S, hidden=H, latent=L,
                     num_heads=num_heads, head_dim=head_dim)

    # No grid: single invocation, all operands fully resident in VMEM
    # (entire problem fits easily; avoids per-grid-step overhead).
    out_pad = pl.pallas_call(
        kernel,
        out_shape=jax.ShapeDtypeStruct((B * S, OUT_PAD), hidden_states.dtype),
    )(x2, w_qlat, b_qlat, w_kv, b_kv, wo_pad, bo_pad)

    return out_pad[:, :H].reshape(B, S, H)


# ---------------------------------------------------------------------------
# Deterministic parameter init (PyTorch nn.Linear-style uniform bounds).
# Weights stored already transposed: (in_features, out_features).
# ---------------------------------------------------------------------------
def init_params(key):
    def linear(k, fan_in, fan_out):
        k1, k2 = jax.random.split(k)
        bound = 1.0 / math.sqrt(fan_in)
        w = jax.random.uniform(k1, (fan_in, fan_out), jnp.float32, -bound, bound)
        b = jax.random.uniform(k2, (1, fan_out), jnp.float32, -bound, bound)
        return w, b

    keys = jax.random.split(key, 5)
    wq, bq = linear(keys[0], HIDDEN, HIDDEN)
    wkv, bkv = linear(keys[1], HIDDEN, LATENT)
    wk, bk = linear(keys[2], LATENT, HIDDEN)
    wv, bv = linear(keys[3], LATENT, HIDDEN)
    wo, bo = linear(keys[4], HIDDEN, HIDDEN)
    return dict(wq=wq, bq=bq, wkv=wkv, bkv=bkv, wk=wk, bk=bk,
                wv=wv, bv=bv, wo=wo, bo=bo)


# ---------------------------------------------------------------------------
# Pure-JAX reference (mirrors the PyTorch forward, eval mode, no mask/cache)
# ---------------------------------------------------------------------------
def mla_reference(x, p):
    B, S, H = x.shape
    q = x @ p["wq"] + p["bq"]
    latent = x @ p["wkv"] + p["bkv"]
    k = latent @ p["wk"] + p["bk"]
    v = latent @ p["wv"] + p["bv"]

    def heads(t):
        return t.reshape(B, S, NUM_HEADS, HEAD_DIM).transpose(0, 2, 1, 3)

    qh, kh, vh = heads(q), heads(k), heads(v)
    scores = jnp.einsum("bhqd,bhkd->bhqk", qh, kh) / math.sqrt(HEAD_DIM)
    probs = jax.nn.softmax(scores, axis=-1)
    ctx = jnp.einsum("bhqk,bhkd->bhqd", probs, vh)
    ctx = ctx.transpose(0, 2, 1, 3).reshape(B, S, H)
    return ctx @ p["wo"] + p["bo"]


# ---------------------------------------------------------------------------
if __name__ == "__main__":
    key = jax.random.PRNGKey(0)
    k_x, k_p = jax.random.split(key)

    hidden_states = jax.random.normal(k_x, (BATCH, SEQ, HIDDEN), jnp.float32)
    params = init_params(k_p)

    out = mla_forward(hidden_states, params)
    out = jax.block_until_ready(out)

    ref = mla_reference(hidden_states, params)
    assert out.shape == (BATCH, SEQ, HIDDEN)
    assert jnp.allclose(out, ref, atol=1e-4, rtol=1e-4), "Pallas output mismatch vs reference"

    print("KERNEL_OK")
</pallas_src>

<mosaic_0001>
module attributes {stable_mosaic.version = 11 : i64} {
  func.func @mla_kernel(%arg0: memref<16x32xf32, #tpu.memory_space<vmem>>, %arg1: memref<32x48xf32, #tpu.memory_space<vmem>>, %arg2: memref<1x48xf32, #tpu.memory_space<vmem>>, %arg3: memref<16x64xf32, #tpu.memory_space<vmem>>, %arg4: memref<1x64xf32, #tpu.memory_space<vmem>>, %arg5: memref<32x128xf32, #tpu.memory_space<vmem>>, %arg6: memref<1x128xf32, #tpu.memory_space<vmem>>, %arg7: memref<16x128xf32, #tpu.memory_space<vmem>>) attributes {dimension_semantics = [], scalar_prefetch = 0 : i64, scratch_operands = 0 : i64, tpu.core_type = #tpu.core_type<tc>} {
    %c0 = arith.constant 0 : index
    %c0_0 = arith.constant 0 : index
    %0 = vector.load %arg0[%c0, %c0_0] : memref<16x32xf32, #tpu.memory_space<vmem>>, vector<16x32xf32>
    %c0_1 = arith.constant 0 : index
    %c0_2 = arith.constant 0 : index
    %1 = vector.load %arg1[%c0_1, %c0_2] : memref<32x48xf32, #tpu.memory_space<vmem>>, vector<32x48xf32>
    %cst = arith.constant dense<0.000000e+00> : vector<16x48xf32>
    %2 = tpu.matmul %0, %1, %cst {dimension_numbers = #tpu.dot_dimension_numbers<[1], [0], [0], [1], [0, 0, 1, 1], [], []>} : vector<16x32xf32>, vector<32x48xf32>, vector<16x48xf32> -> vector<16x48xf32>
    %c0_3 = arith.constant 0 : index
    %c0_4 = arith.constant 0 : index
    %3 = vector.load %arg2[%c0_3, %c0_4] : memref<1x48xf32, #tpu.memory_space<vmem>>, vector<1x48xf32>
    %4 = vector.broadcast %3 : vector<1x48xf32> to vector<16x48xf32>
    %5 = arith.addf %2, %4 : vector<16x48xf32>
    %6 = vector.extract_strided_slice %5 {offsets = [0, 32], sizes = [16, 16], strides = [1, 1]} : vector<16x48xf32> to vector<16x16xf32>
    %c0_5 = arith.constant 0 : index
    %c0_6 = arith.constant 0 : index
    %7 = vector.load %arg3[%c0_5, %c0_6] : memref<16x64xf32, #tpu.memory_space<vmem>>, vector<16x64xf32>
    %cst_7 = arith.constant dense<0.000000e+00> : vector<16x64xf32>
    %8 = tpu.matmul %6, %7, %cst_7 {dimension_numbers = #tpu.dot_dimension_numbers<[1], [0], [0], [1], [0, 0, 1, 1], [], []>} : vector<16x16xf32>, vector<16x64xf32>, vector<16x64xf32> -> vector<16x64xf32>
    %c0_8 = arith.constant 0 : index
    %c0_9 = arith.constant 0 : index
    %9 = vector.load %arg4[%c0_8, %c0_9] : memref<1x64xf32, #tpu.memory_space<vmem>>, vector<1x64xf32>
    %10 = vector.broadcast %9 : vector<1x64xf32> to vector<16x64xf32>
    %11 = arith.addf %8, %10 : vector<16x64xf32>
    %12 = vector.extract_strided_slice %5 {offsets = [0, 0], sizes = [16, 32], strides = [1, 1]} : vector<16x48xf32> to vector<16x32xf32>
    %13 = vector.shape_cast %12 : vector<16x32xf32> to vector<2x8x32xf32>
    %14 = vector.extract_strided_slice %11 {offsets = [0, 0], sizes = [16, 32], strides = [1, 1]} : vector<16x64xf32> to vector<16x32xf32>
    %15 = vector.shape_cast %14 : vector<16x32xf32> to vector<2x8x32xf32>
    %16 = vector.extract_strided_slice %11 {offsets = [0, 32], sizes = [16, 32], strides = [1, 1]} : vector<16x64xf32> to vector<16x32xf32>
    %17 = vector.shape_cast %16 : vector<16x32xf32> to vector<2x8x32xf32>
    %18 = vector.extract_strided_slice %13 {offsets = [0, 0, 0], sizes = [2, 8, 8], strides = [1, 1, 1]} : vector<2x8x32xf32> to vector<2x8x8xf32>
    %19 = vector.extract_strided_slice %15 {offsets = [0, 0, 0], sizes = [2, 8, 8], strides = [1, 1, 1]} : vector<2x8x32xf32> to vector<2x8x8xf32>
    %20 = vector.extract_strided_slice %17 {offsets = [0, 0, 0], sizes = [2, 8, 8], strides = [1, 1, 1]} : vector<2x8x32xf32> to vector<2x8x8xf32>
    "tpu.trace_start"() <{level = 10 : i32, message = "bqd,bkd->bqk"}> : () -> ()
    %cst_10 = arith.constant dense<0.000000e+00> : vector<2x8x8xf32>
    %21 = tpu.matmul %18, %19, %cst_10 {dimension_numbers = #tpu.dot_dimension_numbers<[2], [2], [1], [1], [0, 0, 0, 1, 1, 1], [0], [0]>} : vector<2x8x8xf32>, vector<2x8x8xf32>, vector<2x8x8xf32> -> vector<2x8x8xf32>
    "tpu.trace_stop"() : () -> ()
    %cst_11 = arith.constant 0.353553385 : f32
    %22 = vector.broadcast %cst_11 : f32 to vector<2x8x8xf32>
    %23 = arith.mulf %21, %22 : vector<2x8x8xf32>
    %cst_12 = arith.constant dense<0xFF800000> : vector<2x8xf32>
    %24 = vector.multi_reduction <maximumf>, %23, %cst_12 [2] : vector<2x8x8xf32> to vector<2x8xf32>
    %25 = vector.shape_cast %24 : vector<2x8xf32> to vector<2x8x1xf32>
    %26 = vector.broadcast %25 : vector<2x8x1xf32> to vector<2x8x8xf32>
    %27 = arith.subf %23, %26 : vector<2x8x8xf32>
    %28 = math.exp %27 : vector<2x8x8xf32>
    %cst_13 = arith.constant dense<0.000000e+00> : vector<2x8xf32>
    %29 = vector.multi_reduction <add>, %28, %cst_13 [2] : vector<2x8x8xf32> to vector<2x8xf32>
    %30 = vector.shape_cast %29 : vector<2x8xf32> to vector<2x8x1xf32>
    %31 = tpu.reciprocal %30 : vector<2x8x1xf32> -> vector<2x8x1xf32>
    %32 = vector.broadcast %31 : vector<2x8x1xf32> to vector<2x8x8xf32>
    %33 = arith.mulf %28, %32 : vector<2x8x8xf32>
    "tpu.trace_start"() <{level = 10 : i32, message = "bqk,bkd->bqd"}> : () -> ()
    %cst_14 = arith.constant dense<0.000000e+00> : vector<2x8x8xf32>
    %34 = tpu.matmul %33, %20, %cst_14 {dimension_numbers = #tpu.dot_dimension_numbers<[2], [1], [1], [2], [0, 0, 0, 1, 1, 2], [0], [0]>} : vector<2x8x8xf32>, vector<2x8x8xf32>, vector<2x8x8xf32> -> vector<2x8x8xf32>
    "tpu.trace_stop"() : () -> ()
    %35 = vector.extract_strided_slice %13 {offsets = [0, 0, 8], sizes = [2, 8, 8], strides = [1, 1, 1]} : vector<2x8x32xf32> to vector<2x8x8xf32>
    %36 = vector.extract_strided_slice %15 {offsets = [0, 0, 8], sizes = [2, 8, 8], strides = [1, 1, 1]} : vector<2x8x32xf32> to vector<2x8x8xf32>
    %37 = vector.extract_strided_slice %17 {offsets = [0, 0, 8], sizes = [2, 8, 8], strides = [1, 1, 1]} : vector<2x8x32xf32> to vector<2x8x8xf32>
    "tpu.trace_start"() <{level = 10 : i32, message = "bqd,bkd->bqk"}> : () -> ()
    %cst_15 = arith.constant dense<0.000000e+00> : vector<2x8x8xf32>
    %38 = tpu.matmul %35, %36, %cst_15 {dimension_numbers = #tpu.dot_dimension_numbers<[2], [2], [1], [1], [0, 0, 0, 1, 1, 1], [0], [0]>} : vector<2x8x8xf32>, vector<2x8x8xf32>, vector<2x8x8xf32> -> vector<2x8x8xf32>
    "tpu.trace_stop"() : () -> ()
    %cst_16 = arith.constant 0.353553385 : f32
    %39 = vector.broadcast %cst_16 : f32 to vector<2x8x8xf32>
    %40 = arith.mulf %38, %39 : vector<2x8x8xf32>
    %cst_17 = arith.constant dense<0xFF800000> : vector<2x8xf32>
    %41 = vector.multi_reduction <maximumf>, %40, %cst_17 [2] : vector<2x8x8xf32> to vector<2x8xf32>
    %42 = vector.shape_cast %41 : vector<2x8xf32> to vector<2x8x1xf32>
    %43 = vector.broadcast %42 : vector<2x8x1xf32> to vector<2x8x8xf32>
    %44 = arith.subf %40, %43 : vector<2x8x8xf32>
    %45 = math.exp %44 : vector<2x8x8xf32>
    %cst_18 = arith.constant dense<0.000000e+00> : vector<2x8xf32>
    %46 = vector.multi_reduction <add>, %45, %cst_18 [2] : vector<2x8x8xf32> to vector<2x8xf32>
    %47 = vector.shape_cast %46 : vector<2x8xf32> to vector<2x8x1xf32>
    %48 = tpu.reciprocal %47 : vector<2x8x1xf32> -> vector<2x8x1xf32>
    %49 = vector.broadcast %48 : vector<2x8x1xf32> to vector<2x8x8xf32>
    %50 = arith.mulf %45, %49 : vector<2x8x8xf32>
    "tpu.trace_start"() <{level = 10 : i32, message = "bqk,bkd->bqd"}> : () -> ()
    %cst_19 = arith.constant dense<0.000000e+00> : vector<2x8x8xf32>
    %51 = tpu.matmul %50, %37, %cst_19 {dimension_numbers = #tpu.dot_dimension_numbers<[2], [1], [1], [2], [0, 0, 0, 1, 1, 2], [0], [0]>} : vector<2x8x8xf32>, vector<2x8x8xf32>, vector<2x8x8xf32> -> vector<2x8x8xf32>
    "tpu.trace_stop"() : () -> ()
    %52 = vector.extract_strided_slice %13 {offsets = [0, 0, 16], sizes = [2, 8, 8], strides = [1, 1, 1]} : vector<2x8x32xf32> to vector<2x8x8xf32>
    %53 = vector.extract_strided_slice %15 {offsets = [0, 0, 16], sizes = [2, 8, 8], strides = [1, 1, 1]} : vector<2x8x32xf32> to vector<2x8x8xf32>
    %54 = vector.extract_strided_slice %17 {offsets = [0, 0, 16], sizes = [2, 8, 8], strides = [1, 1, 1]} : vector<2x8x32xf32> to vector<2x8x8xf32>
    "tpu.trace_start"() <{level = 10 : i32, message = "bqd,bkd->bqk"}> : () -> ()
    %cst_20 = arith.constant dense<0.000000e+00> : vector<2x8x8xf32>
    %55 = tpu.matmul %52, %53, %cst_20 {dimension_numbers = #tpu.dot_dimension_numbers<[2], [2], [1], [1], [0, 0, 0, 1, 1, 1], [0], [0]>} : vector<2x8x8xf32>, vector<2x8x8xf32>, vector<2x8x8xf32> -> vector<2x8x8xf32>
    "tpu.trace_stop"() : () -> ()
    %cst_21 = arith.constant 0.353553385 : f32
    %56 = vector.broadcast %cst_21 : f32 to vector<2x8x8xf32>
    %57 = arith.mulf %55, %56 : vector<2x8x8xf32>
    %cst_22 = arith.constant dense<0xFF800000> : vector<2x8xf32>
    %58 = vector.multi_reduction <maximumf>, %57, %cst_22 [2] : vector<2x8x8xf32> to vector<2x8xf32>
    %59 = vector.shape_cast %58 : vector<2x8xf32> to vector<2x8x1xf32>
    %60 = vector.broadcast %59 : vector<2x8x1xf32> to vector<2x8x8xf32>
    %61 = arith.subf %57, %60 : vector<2x8x8xf32>
    %62 = math.exp %61 : vector<2x8x8xf32>
    %cst_23 = arith.constant dense<0.000000e+00> : vector<2x8xf32>
    %63 = vector.multi_reduction <add>, %62, %cst_23 [2] : vector<2x8x8xf32> to vector<2x8xf32>
    %64 = vector.shape_cast %63 : vector<2x8xf32> to vector<2x8x1xf32>
    %65 = tpu.reciprocal %64 : vector<2x8x1xf32> -> vector<2x8x1xf32>
    %66 = vector.broadcast %65 : vector<2x8x1xf32> to vector<2x8x8xf32>
    %67 = arith.mulf %62, %66 : vector<2x8x8xf32>
    "tpu.trace_start"() <{level = 10 : i32, message = "bqk,bkd->bqd"}> : () -> ()
    %cst_24 = arith.constant dense<0.000000e+00> : vector<2x8x8xf32>
    %68 = tpu.matmul %67, %54, %cst_24 {dimension_numbers = #tpu.dot_dimension_numbers<[2], [1], [1], [2], [0, 0, 0, 1, 1, 2], [0], [0]>} : vector<2x8x8xf32>, vector<2x8x8xf32>, vector<2x8x8xf32> -> vector<2x8x8xf32>
    "tpu.trace_stop"() : () -> ()
    %69 = vector.extract_strided_slice %13 {offsets = [0, 0, 24], sizes = [2, 8, 8], strides = [1, 1, 1]} : vector<2x8x32xf32> to vector<2x8x8xf32>
    %70 = vector.extract_strided_slice %15 {offsets = [0, 0, 24], sizes = [2, 8, 8], strides = [1, 1, 1]} : vector<2x8x32xf32> to vector<2x8x8xf32>
    %71 = vector.extract_strided_slice %17 {offsets = [0, 0, 24], sizes = [2, 8, 8], strides = [1, 1, 1]} : vector<2x8x32xf32> to vector<2x8x8xf32>
    "tpu.trace_start"() <{level = 10 : i32, message = "bqd,bkd->bqk"}> : () -> ()
    %cst_25 = arith.constant dense<0.000000e+00> : vector<2x8x8xf32>
    %72 = tpu.matmul %69, %70, %cst_25 {dimension_numbers = #tpu.dot_dimension_numbers<[2], [2], [1], [1], [0, 0, 0, 1, 1, 1], [0], [0]>} : vector<2x8x8xf32>, vector<2x8x8xf32>, vector<2x8x8xf32> -> vector<2x8x8xf32>
    "tpu.trace_stop"() : () -> ()
    %cst_26 = arith.constant 0.353553385 : f32
    %73 = vector.broadcast %cst_26 : f32 to vector<2x8x8xf32>
    %74 = arith.mulf %72, %73 : vector<2x8x8xf32>
    %cst_27 = arith.constant dense<0xFF800000> : vector<2x8xf32>
    %75 = vector.multi_reduction <maximumf>, %74, %cst_27 [2] : vector<2x8x8xf32> to vector<2x8xf32>
    %76 = vector.shape_cast %75 : vector<2x8xf32> to vector<2x8x1xf32>
    %77 = vector.broadcast %76 : vector<2x8x1xf32> to vector<2x8x8xf32>
    %78 = arith.subf %74, %77 : vector<2x8x8xf32>
    %79 = math.exp %78 : vector<2x8x8xf32>
    %cst_28 = arith.constant dense<0.000000e+00> : vector<2x8xf32>
    %80 = vector.multi_reduction <add>, %79, %cst_28 [2] : vector<2x8x8xf32> to vector<2x8xf32>
    %81 = vector.shape_cast %80 : vector<2x8xf32> to vector<2x8x1xf32>
    %82 = tpu.reciprocal %81 : vector<2x8x1xf32> -> vector<2x8x1xf32>
    %83 = vector.broadcast %82 : vector<2x8x1xf32> to vector<2x8x8xf32>
    %84 = arith.mulf %79, %83 : vector<2x8x8xf32>
    "tpu.trace_start"() <{level = 10 : i32, message = "bqk,bkd->bqd"}> : () -> ()
    %cst_29 = arith.constant dense<0.000000e+00> : vector<2x8x8xf32>
    %85 = tpu.matmul %84, %71, %cst_29 {dimension_numbers = #tpu.dot_dimension_numbers<[2], [1], [1], [2], [0, 0, 0, 1, 1, 2], [0], [0]>} : vector<2x8x8xf32>, vector<2x8x8xf32>, vector<2x8x8xf32> -> vector<2x8x8xf32>
    "tpu.trace_stop"() : () -> ()
    %86 = tpu.concatenate %34, %51, %68, %85 in 2 : vector<2x8x8xf32>, vector<2x8x8xf32>, vector<2x8x8xf32>, vector<2x8x8xf32> -> vector<2x8x32xf32>
    %87 = vector.shape_cast %86 : vector<2x8x32xf32> to vector<16x32xf32>
    %c0_30 = arith.constant 0 : index
    %c0_31 = arith.constant 0 : index
    %88 = vector.load %arg5[%c0_30, %c0_31] : memref<32x128xf32, #tpu.memory_space<vmem>>, vector<32x128xf32>
    %cst_32 = arith.constant dense<0.000000e+00> : vector<16x128xf32>
    %89 = tpu.matmul %87, %88, %cst_32 {dimension_numbers = #tpu.dot_dimension_numbers<[1], [0], [0], [1], [0, 0, 1, 1], [], []>} : vector<16x32xf32>, vector<32x128xf32>, vector<16x128xf32> -> vector<16x128xf32>
    %c0_33 = arith.constant 0 : index
    %c0_34 = arith.constant 0 : index
    %90 = vector.load %arg6[%c0_33, %c0_34] : memref<1x128xf32, #tpu.memory_space<vmem>>, vector<1x128xf32>
    %91 = vector.broadcast %90 : vector<1x128xf32> to vector<16x128xf32>
    %92 = arith.addf %89, %91 : vector<16x128xf32>
    %c0_35 = arith.constant 0 : index
    %c0_36 = arith.constant 0 : index
    %93 = vector.load %arg7[%c0_35, %c0_36] : memref<16x128xf32, #tpu.memory_space<vmem>>, vector<16x128xf32>
    tpu.vector_store %arg7[%c0_35, %c0_36], %92 {strides = array<i32>} : memref<16x128xf32, #tpu.memory_space<vmem>>, vector<16x128xf32>,
    return
  }
}

</mosaic_0001>

<bundles_post_ra>
// kernel: tpu_custom_call.1
= control target key start
LH: loop header
LB: loop body
LE: loop exit
PB: predicated region body
PF: predicated region fallthrough
CT: control target
= control target key end

     0   :  { %12 = vsyncpa [#allocation3], 0  ;;  %s1329_s0 = inlined_call_operand.hbm [shape: f32[16,32], index: 0, kind: input, shape index: {}]   ;;  %s1330_s1 = inlined_call_operand.hbm [shape: f32[32,48], index: 1, kind: input, shape index: {}]   ;;  %s1331_s2 = inlined_call_operand.vmem [shape: f32[1,48], index: 2, kind: input, shape index: {}]   ;;  %s1332_s3 = inlined_call_operand.hbm [shape: f32[16,64], index: 3, kind: input, shape index: {}]   ;;  %s1333_s4 = inlined_call_operand.vmem [shape: f32[1,64], index: 4, kind: input, shape index: {}]   ;;  %s1334_s5 = inlined_call_operand.hbm [shape: f32[32,128], index: 5, kind: input, shape index: {}]   ;;  %s1335_s6 = inlined_call_operand.vmem [shape: f32[1,128], index: 6, kind: input, shape index: {}]   ;;  %s1336_s7 = inlined_call_operand.hbm [shape: f32[16,128], index: 7, kind: output, shape index: {}]  }
   0x1   :  { %13 = vsyncpa [#allocation6], 0 }
   0x2   :  { %14 = vsyncpa [#allocation9], 0 }
   0x3   :  { %15 = vsyncpa [#allocation4], 0  ;;  %s33_s26 = sshll.u32 %s1330_s1, 4  ;;  %s1099_s27 = smov [#allocation5]   ;;  %s34_s26 = int_to_ptr.hbm [resolvable:$true] %s33_s26 }
   0x4   :  { %s35_s28 = sshll.u32 %s1099_s27, 4  ;;  %s20_s8 = sshll.u32 %s1329_s0, 4  ;;  %s36_s28 = int_to_ptr.vmem [resolvable:$true] %s35_s28  ;;  %s21_s8 = int_to_ptr.hbm [resolvable:$true] %s20_s8 }
   0x5   :  { %s1100_s9 = smov 128   ;;  %s1101_s10 = smov 8  }
   0x6   :  { %41 = dma.hbm_to_vmem [thread:$0]  %s34_s26, 512, %s36_s28, [#allocation6], %s1100_s9, %s1100_s9, %s1101_s10  }
   0x7   :  { %s1102_s11 = smov [#allocation2]   ;;  %s48_s1 = sshll.u32 %s1332_s3, 4  ;;  %s49_s1 = int_to_ptr.hbm [resolvable:$true] %s48_s1 }
   0x8   :  { %s22_s12 = sshll.u32 %s1102_s11, 4  ;;  %s63_s16 = sshll.u32 %s1334_s5, 4  ;;  %s23_s12 = int_to_ptr.vmem [resolvable:$true] %s22_s12  ;;  %s64_s16 = int_to_ptr.hbm [resolvable:$true] %s63_s16 }
   0x9   :  { %28 = dma.hbm_to_vmem [thread:$0]  %s21_s8, 256, %s23_s12, [#allocation3], %s1100_s9, %s1100_s9, %s1101_s10  }
   0xa   :  { %s1103_s17 = smov [#allocation7]   ;;  %s1104_s19 = smov [#allocation8]  }
   0xb   :  { %s50_s18 = sshll.u32 %s1103_s17, 4  ;;  %s65_s3 = sshll.u32 %s1104_s19, 4  ;;  %s51_s18 = int_to_ptr.vmem [resolvable:$true] %s50_s18  ;;  %s66_s3 = int_to_ptr.vmem [resolvable:$true] %s65_s3 }
   0xc   :  { %56 = dma.hbm_to_vmem [thread:$0]  %s49_s1, 256, %s51_s18, [#allocation6], %s1100_s9, %s1100_s9, %s1101_s10  }
   0xd   :  { %71 = dma.hbm_to_vmem [thread:$0]  %s64_s16, 512, %s66_s3, [#allocation9], %s1100_s9, %s1100_s9, %s1101_s10  }
   0xe   :  { %1091 = dma.done.wait [#allocation3], 256  }
   0xf   :  { %1092 = vsyncadd [#allocation3], 4294967040 }
  0x10   :  { %1093 = dma.done.wait [#allocation6], 768  }
  0x11   :  { %1094 = vsyncadd [#allocation6], 4294966528 }
  0x12   :  { %1095 = dma.done.wait [#allocation9], 512  }
  0x13   :  { %1096 = vsyncadd [#allocation9], 4294966784  ;;  %v95_v0 = vld [vmem:[#allocation5 + $0x18] sm:$0xff]  ;;  %v94_v1 = vld [vmem:[#allocation5 + $0x10] sm:$0xff]  ;;  %vm100_vm0 = vcmask 261120   ;;  %s1105_s21 = smov 96  }
  0x14   :  { %119 = vmatpush.msra.mxu0 %v95_v0  ;;  %v93_v2 = vld [vmem:[#allocation5 + $0x8] sm:$0xff]  ;;  %v92_v3 = vld [vmem:[#allocation5] sm:$0xff]  ;;  %v90_v4 = vld [vmem:[#allocation2] sm:$0xff]  ;;  %s1106_s22 = smov 120   ;;  %vm142_vm1 = vcmask 130048   ;;  %vm170_vm2 = vcmask 64512  }
  0x15   :  { %v91_v5 = vld [vmem:[#allocation2 + $0x8] sm:$0xff]  ;;  %v131_v6 = vld [vmem:[#allocation7 + $0x8] sm:$0xff]  ;;  %v130_v7 = vld [vmem:[#allocation7] sm:$0xff]  ;;  %s1107_s24 = smov 112   ;;  %s1109_s25 = smov 88  }
  0x16   :  { %120 = vmatpush.msra.mxu0 %v94_v1  ;;  %161 = vmatpush.msra.mxu1 %v131_v6  ;;  %v936_v8 = vld [vmem:[%s1331_s2] ss:$0 sm:$0xff]  ;;  %s1110_s26 = smov 80   ;;  %s1111_s27 = smov 72  }
  0x17   :  { %918 = vmatpush.msra.mxu2 %v131_v6  ;;  %v937_v15 = vld [vmem:[%s1333_s4] ss:$0 sm:$0xff]  ;;  %s1108_s4 = smov 104   ;;  %s1112_s28 = smov 16  }
  0x18   :  { %121 = vmatpush.msra.mxu0 %v93_v2  ;;  %162 = vmatpush.msra.mxu1 %v130_v7  ;;  %s1113_s29 = smov 24   ;;  %s1114_s11 = smov [#allocation10]  }
  0x19   :  { %919 = vmatpush.msra.mxu2 %v130_v7  ;;  %s871_s12 = sshll.u32 %s1114_s11, 4  ;;  %s873_s1 = sshll.u32 %s1336_s7, 4  ;;  %s872_s12 = int_to_ptr.vmem [resolvable:$true] %s871_s12  ;;  %s874_s1 = int_to_ptr.hbm [resolvable:$true] %s873_s1 }
  0x1a   :  { %122 = vmatpush.msra.mxu0 %v92_v3 }
  0x1b   :  { %888 = vmatmul.msk.f32.vlgmr.msra.gmra.mxu0 %vm100_vm0, %v90_v4 }
  0x23   :  { %889 = vmatmul.msk.f32.gmra.mxu0 %vm100_vm0, %v91_v5 }
  0x98   :  { %v124_v9 = vpop.f32.mrf.mxu0 }
  0x99   :  { %v125_v10 = vadd.f32 %v936_v8, %v124_v9 }
  0x9b   :  { %138 = vrot.lane.b32.xlu0 %v125_v10, %s1105_s21 }
  0xa0   :  { %v127_v11 = vpop.f32.mrf.mxu0 }
  0xa1   :  { %v128_v12 = vadd.f32 %v936_v8, %v127_v11 }
  0xa3   :  { %140 = vrot.lane.b32.xlu0 %v128_v12, %s1105_s21 }
  0xab   :  { %323 = vrot.lane.b32.xlu0 %v125_v10, %s1106_s22 }
  0xb3   :  { %351 = vrot.lane.b32.xlu0 %v128_v12, %s1106_s22 }
 0x10d   :  { %v139_v13 = vpop.permute.xlu0 %138 }
 0x10e   :  { %890 = vmatmul.msk.f32.vlgmr.msra.gmra.mxu1 %vm142_vm1, %v139_v13 }
 0x115   :  { %v141_v14 = vpop.permute.xlu0 %140 }
 0x116   :  { %891 = vmatmul.msk.f32.vlgmr.msra.gmra.mxu2 %vm142_vm1, %v141_v14 }
 0x11d   :  { %v324_v21 = vpop.permute.xlu0 %323 }
 0x125   :  { %v352_v43 = vpop.permute.xlu0 %351 }
 0x18b   :  { %v164_v16 = vpop.f32.mrf.mxu1 }
 0x18c   :  { %v1193_v17 = vadd.f32 %v937_v15, %v164_v16 }
 0x18e   :  { %325 = vrot.lane.b32.xlu2 %v1193_v17, %s1106_s22  ;;  %892 = vmatpush.xpose.msk.msrb.mxu2 %vm170_vm2, %v1193_v17 }
 0x191   :  { %893 = vmatmul.msk.f32.vlgmr.msrb.gmra.mxu2 %vm170_vm2, %v125_v10 }
 0x196   :  { %271 = vrot.lane.b32.xlu2 %v1193_v17, %s1105_s21 }
 0x199   :  { %v167_v18 = vpop.f32.mrf.mxu2 }
 0x19a   :  { %v1202_v19 = vadd.f32 %v937_v15, %v167_v18 }
 0x19c   :  { %511 = vrot.lane.b32.xlu0 %v1202_v19, %s1107_s24  ;;  %894 = vmatpush.xpose.msk.msra.mxu3 %vm170_vm2, %v1202_v19 }
 0x19e   :  { %483 = vrot.lane.b32.xlu2 %v1193_v17, %s1107_s24 }
 0x19f   :  { %895 = vmatmul.msk.f32.vlgmr.msra.gmra.mxu3 %vm170_vm2, %v128_v12 }
 0x1a4   :  { %509 = vrot.lane.b32.xlu0 %v128_v12, %s1107_s24 }
 0x1a6   :  { %481 = vrot.lane.b32.xlu2 %v125_v10, %s1107_s24 }
 0x1ac   :  { %667 = vrot.lane.b32.xlu0 %v128_v12, %s1108_s4 }
 0x1ae   :  { %641 = vrot.lane.b32.xlu2 %v1193_v17, %s1108_s4 }
 0x1b6   :  { %639 = vrot.lane.b32.xlu2 %v125_v10, %s1108_s4 }
 0x1e8   :  { %v326_v20 = vpop.permute.xlu2 %325 }
 0x1e9   :  { %898 = vmatpush.xpose.msk.msrb.mxu1 %vm170_vm2, %v326_v20 }
 0x1ec   :  { %899 = vmatmul.msk.f32.vlgmr.msrb.gmra.mxu1 %vm170_vm2, %v324_v21 }
 0x1f0   :  { %v272_v22 = vpop.permute.xlu2 %271 }
 0x1f1   :  { %292 = vmatpush.msra.mxu2 %v272_v22 }
 0x1f8   :  { %v484_v23 = vpop.permute.xlu2 %483 }
 0x1f9   :  { %904 = vmatpush.xpose.msk.msra.mxu1 %vm170_vm2, %v484_v23 }
 0x200   :  { %v482_v24 = vpop.permute.xlu2 %481 }
 0x201   :  { %905 = vmatmul.msk.f32.vlgmr.msra.gmra.mxu1 %vm170_vm2, %v482_v24 }
 0x208   :  { %v642_v25 = vpop.permute.xlu2 %641 }
 0x209   :  { %910 = vmatpush.xpose.msk.msrb.mxu1 %vm170_vm2, %v642_v25 }
 0x20e   :  { %v512_v46 = vpop.permute.xlu0 %511 }
 0x210   :  { %v640_v26 = vpop.permute.xlu2 %639 }
 0x211   :  { %911 = vmatmul.msk.f32.vlgmr.msrb.gmra.mxu1 %vm170_vm2, %v640_v26 }
 0x214   :  { %v193_v27 = vpop.f32.mrf.mxu2 }
 0x215   :  { %v221_v28 = vmul.f32 0.35355338, %v193_v27 }
 0x216   :  { %v510_v53 = vpop.permute.xlu0 %509 }
 0x217   :  { %v223_v29 = vsel %vm170_vm2, %v221_v28, -inf }
 0x218   :  { %224 = vmax.xlane.f32.xlu1 %v223_v29 }
 0x21e   :  { %v668_v56 = vpop.permute.xlu0 %667 }
 0x222   :  { %v218_v30 = vpop.f32.mrf.mxu3 }
 0x223   :  { %v222_v31 = vmul.f32 0.35355338, %v218_v30 }
 0x225   :  { %v226_v32 = vsel %vm170_vm2, %v222_v31, -inf }
 0x226   :  { %227 = vmax.xlane.f32.xlu2 %v226_v32 }
 0x231   :  { %353 = vrot.lane.b32.xlu1 %v1202_v19, %s1106_s22 }
 0x269   :  { %v348_v33 = vpop.f32.mrf.mxu1 }
 0x26a   :  { %v379_v44 = vmul.f32 0.35355338, %v348_v33 }
 0x26c   :  { %v381_v48 = vsel %vm170_vm2, %v379_v44, -inf }
 0x27e   :  { %v506_v34 = vpop.f32.mrf.mxu1 }
 0x27f   :  { %v537_v35 = vmul.f32 0.35355338, %v506_v34 }
 0x281   :  { %v539_v36 = vsel %vm170_vm2, %v537_v35, -inf }
 0x282   :  { %540 = vmax.xlane.f32.xlu0 %v539_v36 }
 0x28b   :  { %v225_v37 = vpop.xlane.xlu1 %224 }
 0x28c   :  { %v229_v38 = vsub.f32 %v221_v28, %v225_v37 }
 0x28e   :  { %v231_v39 = vmul.f32 1.442695, %v229_v38  ;;  %v664_v49 = vpop.f32.mrf.mxu1 }
 0x28f   :  { %v695_v51 = vmul.f32 0.35355338, %v664_v49 }
 0x290   :  { %939 = vpow2.f32 %v231_v39 }
 0x291   :  { %v697_v52 = vsel %vm170_vm2, %v695_v51, -inf }
 0x296   :  { %v940_v40 = vpop.eup %939 }
 0x297   :  { %v235_v41 = vsel %vm170_vm2, %v940_v40, 0.0 }
 0x298   :  { %236 = vadd.xlane.f32.xlu1 %v235_v41 }
 0x299   :  { %v228_v45 = vpop.xlane.xlu2 %227 }
 0x29a   :  { %v230_v47 = vsub.f32 %v222_v31, %v228_v45 }
 0x29c   :  { %v233_v50 = vmul.f32 1.442695, %v230_v47 }
 0x29e   :  { %941 = vpow2.f32 %v233_v50 }
 0x2a3   :  { %v354_v42 = vpop.permute.xlu1 %353 }
 0x2a4   :  { %900 = vmatpush.xpose.msk.msrb.mxu2 %vm170_vm2, %v354_v42  ;;  %v1230_v54 = vpop.eup %941 }
 0x2a5   :  { %v238_v55 = vsel %vm170_vm2, %v1230_v54, 0.0 }
 0x2b1   :  { %669 = vrot.lane.b32.xlu1 %v1202_v19, %s1108_s4 }
 0x2db   :  { %382 = vmax.xlane.f32.xlu1 %v381_v48 }
 0x2e3   :  { %698 = vmax.xlane.f32.xlu1 %v697_v52 }
 0x2eb   :  { %239 = vadd.xlane.f32.xlu1 %v238_v55 }
 0x2f5   :  { %v541_v57 = vpop.xlane.xlu0 %540 }
 0x2f6   :  { %v545_v58 = vsub.f32 %v537_v35, %v541_v57 }
 0x2f8   :  { %v547_v59 = vmul.f32 1.442695, %v545_v58 }
 0x2fa   :  { %943 = vpow2.f32 %v547_v59 }
 0x300   :  { %v1234_v60 = vpop.eup %943 }
 0x301   :  { %v551_v61 = vsel %vm170_vm2, %v1234_v60, 0.0 }
 0x302   :  { %552 = vadd.xlane.f32.xlu0 %v551_v61 }
 0x304   :  { %297 = vrot.lane.b32.xlu1 %v1202_v19, %s1105_s21 }
 0x30b   :  { %v237_v62 = vpop.xlane.xlu1 %236 }
 0x30c   :  { %945 = vrcp.f32 %v237_v62  ;;  %v252_v2 = vand.u32 2147483648, %v237_v62  ;;  %v250_v4 = vand.u32 2147483647, %v237_v62  ;;  %vm246_vm4 = vweird.f32 %v237_v62 }
 0x30e   :  { %v253_v6 = vor.u32 1.1754944e-38, %v252_v2  ;;  %vm251_vm6 = vcmp.eq.f32.partialorder %v250_v4, 8.507059e+37 }
 0x312   :  { %v946_v63 = vpop.eup %945 }
 0x313   :  { %v242_v0 = vmul.f32 %v946_v63, %v237_v62  ;;  %vm247_vm3 = vweird.f32 %v946_v63 }
 0x314   :  { %vm248_vm5 = vmor %vm246_vm4, %vm247_vm3 }
 0x315   :  { %v243_v1 = vsub.f32 1.0, %v242_v0 }
 0x317   :  { %v244_v3 = vmul.f32 %v946_v63, %v243_v1 }
 0x319   :  { %v245_v5 = vadd.f32 %v946_v63, %v244_v3 }
 0x31b   :  { %v249_v7 = vsel %vm248_vm5, %v946_v63, %v245_v5 }
 0x31c   :  { %v254_v8 = vsel %vm251_vm6, %v253_v6, %v249_v7 }
 0x31d   :  { %v269_v9 = vmul.f32 %v940_v40, %v254_v8 }
 0x31f   :  { %896 = vmatmul.msk.f32.vlgmr.msra.gmra.mxu2 %vm170_vm2, %v269_v9 }
 0x320   :  { %906 = vmatpush.xpose.msk.msra.mxu2 %vm170_vm2, %v512_v46 }
 0x323   :  { %v670_v10 = vpop.permute.xlu1 %669 }
 0x327   :  { %901 = vmatmul.msk.f32.vlgmr.msrb.gmra.mxu2 %vm170_vm2, %v352_v43 }
 0x328   :  { %912 = vmatpush.xpose.msk.msrb.mxu2 %vm170_vm2, %v670_v10 }
 0x32f   :  { %907 = vmatmul.msk.f32.vlgmr.msra.gmra.mxu2 %vm170_vm2, %v510_v53 }
 0x337   :  { %913 = vmatmul.msk.f32.vlgmr.msrb.gmra.mxu2 %vm170_vm2, %v668_v56 }
 0x34e   :  { %v383_v11 = vpop.xlane.xlu1 %382 }
 0x34f   :  { %v387_v12 = vsub.f32 %v379_v44, %v383_v11 }
 0x351   :  { %v389_v13 = vmul.f32 1.442695, %v387_v12 }
 0x353   :  { %947 = vpow2.f32 %v389_v13 }
 0x356   :  { %v699_v14 = vpop.xlane.xlu1 %698 }
 0x357   :  { %v703_v15 = vsub.f32 %v695_v51, %v699_v14 }
 0x359   :  { %v1246_v16 = vpop.eup %947  ;;  %v705_v18 = vmul.f32 1.442695, %v703_v15 }
 0x35a   :  { %v393_v20 = vsel %vm170_vm2, %v1246_v16, 0.0 }
 0x35b   :  { %949 = vpow2.f32 %v705_v18  ;;  %394 = vadd.xlane.f32.xlu2 %v393_v20 }
 0x35e   :  { %v240_v21 = vpop.xlane.xlu1 %239 }
 0x35f   :  { %951 = vrcp.f32 %v240_v21  ;;  %v266_v29 = vand.u32 2147483648, %v240_v21  ;;  %vm260_vm8 = vweird.f32 %v240_v21  ;;  %v264_v30 = vand.u32 2147483647, %v240_v21 }
 0x361   :  { %v1250_v22 = vpop.eup %949  ;;  %v267_v32 = vor.u32 1.1754944e-38, %v266_v29  ;;  %vm265_vm10 = vcmp.eq.f32.partialorder %v264_v30, 8.507059e+37 }
 0x362   :  { %v709_v23 = vsel %vm170_vm2, %v1250_v22, 0.0 }
 0x363   :  { %710 = vadd.xlane.f32.xlu0 %v709_v23 }
 0x365   :  { %v952_v24 = vpop.eup %951 }
 0x366   :  { %v256_v25 = vmul.f32 %v952_v24, %v240_v21  ;;  %vm261_vm7 = vweird.f32 %v952_v24 }
 0x367   :  { %vm262_vm9 = vmor %vm260_vm8, %vm261_vm7 }
 0x368   :  { %v257_v26 = vsub.f32 1.0, %v256_v25 }
 0x36a   :  { %v258_v27 = vmul.f32 %v952_v24, %v257_v26 }
 0x36c   :  { %v259_v28 = vadd.f32 %v952_v24, %v258_v27 }
 0x36e   :  { %v263_v31 = vsel %vm262_vm9, %v952_v24, %v259_v28 }
 0x36f   :  { %v268_v33 = vsel %vm265_vm10, %v267_v32, %v263_v31 }
 0x370   :  { %v270_v35 = vmul.f32 %v1230_v54, %v268_v33 }
 0x375   :  { %v553_v50 = vpop.xlane.xlu0 %552 }
 0x376   :  { %v298_v34 = vpop.permute.xlu1 %297  ;;  %v568_v18 = vand.u32 2147483648, %v553_v50  ;;  %vm562_vm3 = vweird.f32 %v553_v50 }
 0x377   :  { %318 = vmatpush.msrb.mxu3 %v298_v34 }
 0x378   :  { %897 = vmatmul.msk.f32.vlgmr.msrb.gmra.mxu3 %vm170_vm2, %v270_v35  ;;  %v569_v24 = vor.u32 1.1754944e-38, %v568_v18 }
 0x3a2   :  { %v1256_v36 = vpop.f32.mrf.mxu2 }
 0x3aa   :  { %v376_v37 = vpop.f32.mrf.mxu2 }
 0x3ab   :  { %v380_v38 = vmul.f32 0.35355338, %v376_v37 }
 0x3ad   :  { %v384_v39 = vsel %vm170_vm2, %v380_v38, -inf }
 0x3ae   :  { %385 = vmax.xlane.f32.xlu2 %v384_v39 }
 0x3b2   :  { %v534_v40 = vpop.f32.mrf.mxu2 }
 0x3b3   :  { %v538_v41 = vmul.f32 0.35355338, %v534_v40 }
 0x3b5   :  { %v542_v42 = vsel %vm170_vm2, %v538_v41, -inf }
 0x3b6   :  { %543 = vmax.xlane.f32.xlu2 %v542_v42 }
 0x3ba   :  { %v692_v43 = vpop.f32.mrf.mxu2 }
 0x3bb   :  { %v696_v44 = vmul.f32 0.35355338, %v692_v43 }
 0x3bd   :  { %v700_v45 = vsel %vm170_vm2, %v696_v44, -inf }
 0x3be   :  { %701 = vmax.xlane.f32.xlu0 %v700_v45 }
 0x3ce   :  { %429 = vrot.lane.b32.xlu2 %v1193_v17, %s1109_s25  ;;  %v395_v46 = vpop.xlane.xlu2 %394 }
 0x3cf   :  { %953 = vrcp.f32 %v395_v46  ;;  %v410_v56 = vand.u32 2147483648, %v395_v46  ;;  %vm404_vm12 = vweird.f32 %v395_v46  ;;  %v408_v57 = vand.u32 2147483647, %v395_v46 }
 0x3d0   :  { %955 = vrcp.f32 %v553_v50 }
 0x3d1   :  { %v411_v1 = vor.u32 1.1754944e-38, %v410_v56  ;;  %vm409_vm14 = vcmp.eq.f32.partialorder %v408_v57, 8.507059e+37 }
 0x3d2   :  { %587 = vrot.lane.b32.xlu0 %v1193_v17, %s1110_s26 }
 0x3d5   :  { %v954_v47 = vpop.eup %953 }
 0x3d6   :  { %v400_v48 = vmul.f32 %v954_v47, %v395_v46  ;;  %vm405_vm11 = vweird.f32 %v954_v47  ;;  %v1265_v58 = vpop.xlane.xlu0 %710  ;;  %v956_v62 = vpop.eup %955 }
 0x3d7   :  { %vm406_vm13 = vmor %vm404_vm12, %vm405_vm11  ;;  %v558_v4 = vmul.f32 %v956_v62, %v553_v50  ;;  %vm563_vm15 = vweird.f32 %v956_v62  ;;  %vm720_vm11 = vweird.f32 %v1265_v58 }
 0x3d8   :  { %v401_v49 = vsub.f32 1.0, %v400_v48  ;;  %vm564_vm4 = vmor %vm562_vm3, %vm563_vm15  ;;  %v726_v48 = vand.u32 2147483648, %v1265_v58 }
 0x3d9   :  { %v559_v9 = vsub.f32 1.0, %v558_v4 }
 0x3da   :  { %v402_v53 = vmul.f32 %v954_v47, %v401_v49 }
 0x3db   :  { %v560_v14 = vmul.f32 %v956_v62, %v559_v9 }
 0x3dc   :  { %v403_v55 = vadd.f32 %v954_v47, %v402_v53 }
 0x3dd   :  { %v561_v15 = vadd.f32 %v956_v62, %v560_v14 }
 0x3de   :  { %v407_v63 = vsel %vm406_vm13, %v954_v47, %v403_v55 }
 0x3df   :  { %v412_v5 = vsel %vm409_vm14, %v411_v1, %v407_v63  ;;  %v565_v23 = vsel %vm564_vm4, %v956_v62, %v561_v15 }
 0x3e0   :  { %v427_v8 = vmul.f32 %v1246_v16, %v412_v5  ;;  %v566_v16 = vand.u32 2147483647, %v553_v50 }
 0x3e2   :  { %vm567_vm5 = vcmp.eq.f32.partialorder %v566_v16, 8.507059e+37  ;;  %v831_v16 = vld [vmem:[#allocation8 + $0x18] sm:$0xff] }
 0x3e3   :  { %v570_v25 = vsel %vm567_vm5, %v569_v24, %v565_v23  ;;  %854 = vmatpush.msra.mxu1 %v831_v16  ;;  %v829_v23 = vld [vmem:[#allocation8 + $0x8] sm:$0xff] }
 0x3e4   :  { %v585_v27 = vmul.f32 %v1234_v60, %v570_v25 }
 0x421   :  { %v386_v51 = vpop.xlane.xlu2 %385 }
 0x422   :  { %v388_v52 = vsub.f32 %v380_v38, %v386_v51  ;;  %v724_v51 = vand.u32 2147483647, %v1265_v58 }
 0x424   :  { %v391_v54 = vmul.f32 1.442695, %v388_v52  ;;  %vm725_vm15 = vcmp.eq.f32.partialorder %v724_v51, 8.507059e+37 }
 0x426   :  { %957 = vpow2.f32 %v391_v54 }
 0x429   :  { %v544_v59 = vpop.xlane.xlu2 %543 }
 0x42a   :  { %v546_v61 = vsub.f32 %v538_v41, %v544_v59 }
 0x42c   :  { %v1267_v0 = vpop.eup %957  ;;  %v549_v2 = vmul.f32 1.442695, %v546_v61  ;;  %v727_v61 = vor.u32 1.1754944e-38, %v726_v48 }
 0x42d   :  { %v396_v3 = vsel %vm170_vm2, %v1267_v0, 0.0 }
 0x42e   :  { %959 = vpow2.f32 %v549_v2  ;;  %397 = vadd.xlane.f32.xlu2 %v396_v3 }
 0x431   :  { %v430_v6 = vpop.permute.xlu2 %429  ;;  %v702_v7 = vpop.xlane.xlu0 %701 }
 0x432   :  { %v704_v10 = vsub.f32 %v696_v44, %v702_v7  ;;  %450 = vmatpush.msra.mxu3 %v430_v6 }
 0x433   :  { %902 = vmatmul.msk.f32.vlgmr.msra.gmra.mxu3 %vm170_vm2, %v427_v8 }
 0x434   :  { %v1273_v11 = vpop.eup %959  ;;  %v707_v12 = vmul.f32 1.442695, %v704_v10 }
 0x435   :  { %v554_v13 = vsel %vm170_vm2, %v1273_v11, 0.0 }
 0x436   :  { %961 = vpow2.f32 %v707_v12  ;;  %555 = vadd.xlane.f32.xlu0 %v554_v13 }
 0x437   :  { %963 = vrcp.f32 %v1265_v58 }
 0x43c   :  { %v1277_v20 = vpop.eup %961 }
 0x43d   :  { %v712_v21 = vsel %vm170_vm2, %v1277_v20, 0.0  ;;  %v964_v29 = vpop.eup %963 }
 0x43e   :  { %713 = vadd.xlane.f32.xlu1 %v712_v21  ;;  %v716_v60 = vmul.f32 %v964_v29, %v1265_v58  ;;  %vm721_vm9 = vweird.f32 %v964_v29  ;;  %v830_v21 = vld [vmem:[#allocation8 + $0x10] sm:$0xff] }
 0x43f   :  { %vm1297_vm12 = vmor %vm720_vm11, %vm721_vm9  ;;  %855 = vmatpush.msra.mxu1 %v830_v21  ;;  %vm825_vm9 = vcmask 195584  }
 0x440   :  { %v717_v34 = vsub.f32 1.0, %v716_v60 }
 0x441   :  { %856 = vmatpush.msra.mxu1 %v829_v23 }
 0x442   :  { %v718_v38 = vmul.f32 %v964_v29, %v717_v34 }
 0x444   :  { %v588_v26 = vpop.permute.xlu0 %587  ;;  %v719_v47 = vadd.f32 %v964_v29, %v718_v38 }
 0x445   :  { %608 = vmatpush.msrb.mxu3 %v588_v26 }
 0x446   :  { %455 = vrot.lane.b32.xlu2 %v1202_v19, %s1109_s25  ;;  %908 = vmatmul.msk.f32.vlgmr.msrb.gmra.mxu3 %vm170_vm2, %v585_v27  ;;  %v723_v57 = vsel %vm1297_vm12, %v964_v29, %v719_v47  ;;  %v828_v27 = vld [vmem:[#allocation8] sm:$0xff] }
 0x447   :  { %857 = vmatpush.msra.mxu1 %v828_v27 }
 0x44a   :  { %745 = vrot.lane.b32.xlu0 %v1193_v17, %s1111_s27 }
 0x44e   :  { %613 = vrot.lane.b32.xlu2 %v1202_v19, %s1110_s26 }
 0x452   :  { %771 = vrot.lane.b32.xlu0 %v1202_v19, %s1111_s27  ;;  %v1291_v19 = vpop.f32.mrf.mxu3 }
 0x4a1   :  { %v398_v28 = vpop.xlane.xlu2 %397 }
 0x4a2   :  { %965 = vrcp.f32 %v398_v28  ;;  %v424_v37 = vand.u32 2147483648, %v398_v28  ;;  %v422_v39 = vand.u32 2147483647, %v398_v28  ;;  %vm418_vm7 = vweird.f32 %v398_v28 }
 0x4a4   :  { %v425_v42 = vor.u32 1.1754944e-38, %v424_v37  ;;  %vm423_vm10 = vcmp.eq.f32.partialorder %v422_v39, 8.507059e+37 }
 0x4a8   :  { %v966_v30 = vpop.eup %965 }
 0x4a9   :  { %v414_v31 = vmul.f32 %v966_v30, %v398_v28  ;;  %v456_v32 = vpop.permute.xlu2 %455  ;;  %v556_v33 = vpop.xlane.xlu0 %555  ;;  %vm419_vm6 = vweird.f32 %v966_v30 }
 0x4aa   :  { %967 = vrcp.f32 %v556_v33  ;;  %476 = vmatpush.msrb.mxu0 %v456_v32  ;;  %vm420_vm8 = vmor %vm418_vm7, %vm419_vm6  ;;  %v582_v52 = vand.u32 2147483648, %v556_v33  ;;  %v580_v56 = vand.u32 2147483647, %v556_v33  ;;  %vm576_vm14 = vweird.f32 %v556_v33 }
 0x4ab   :  { %v415_v17 = vsub.f32 1.0, %v414_v31 }
 0x4ac   :  { %v583_v63 = vor.u32 1.1754944e-38, %v582_v52  ;;  %vm581_vm4 = vcmp.eq.f32.partialorder %v580_v56, 8.507059e+37 }
 0x4ad   :  { %v416_v35 = vmul.f32 %v966_v30, %v415_v17 }
 0x4af   :  { %v417_v40 = vadd.f32 %v966_v30, %v416_v35 }
 0x4b0   :  { %v968_v41 = vpop.eup %967 }
 0x4b1   :  { %v572_v43 = vmul.f32 %v968_v41, %v556_v33  ;;  %v614_v44 = vpop.permute.xlu2 %613  ;;  %v714_v45 = vpop.xlane.xlu1 %713  ;;  %v421_v46 = vsel %vm420_vm8, %v966_v30, %v417_v40  ;;  %vm577_vm13 = vweird.f32 %v968_v41 }
 0x4b2   :  { %969 = vrcp.f32 %v714_v45  ;;  %634 = vmatpush.msra.mxu0 %v614_v44  ;;  %v426_v50 = vsel %vm423_vm10, %v425_v42, %v421_v46  ;;  %vm578_vm3 = vmor %vm576_vm14, %vm577_vm13  ;;  %v740_v6 = vand.u32 2147483648, %v714_v45  ;;  %v738_v10 = vand.u32 2147483647, %v714_v45 }
 0x4b3   :  { %v573_v49 = vsub.f32 1.0, %v572_v43  ;;  %v428_v53 = vmul.f32 %v1267_v0, %v426_v50  ;;  %v728_v0 = vsel %vm725_vm15, %v727_v61, %v723_v57  ;;  %vm734_vm6 = vweird.f32 %v714_v45 }
 0x4b4   :  { %v743_v8 = vmul.f32 %v1250_v22, %v728_v0  ;;  %v741_v13 = vor.u32 1.1754944e-38, %v740_v6  ;;  %vm739_vm8 = vcmp.eq.f32.partialorder %v738_v10, 8.507059e+37 }
 0x4b5   :  { %v574_v55 = vmul.f32 %v968_v41, %v573_v49  ;;  %903 = vmatmul.msk.f32.vlgmr.msrb.gmra.mxu0 %vm170_vm2, %v428_v53 }
 0x4b6   :  { %v452_v59 = vpop.f32.mrf.mxu3 }
 0x4b7   :  { %v575_v62 = vadd.f32 %v968_v41, %v574_v55  ;;  %799 = vrot.lane.b32.xlu2 %v452_v59, %s1101_s10 }
 0x4b8   :  { %v970_v58 = vpop.eup %969 }
 0x4b9   :  { %v579_v1 = vsel %vm578_vm3, %v968_v41, %v575_v62  ;;  %v730_v2 = vmul.f32 %v970_v58, %v714_v45  ;;  %vm735_vm5 = vweird.f32 %v970_v58 }
 0x4ba   :  { %v584_v3 = vsel %vm581_vm4, %v583_v63, %v579_v1  ;;  %vm736_vm7 = vmor %vm734_vm6, %vm735_vm5 }
 0x4bb   :  { %v731_v4 = vsub.f32 1.0, %v730_v2  ;;  %v586_v5 = vmul.f32 %v1273_v11, %v584_v3 }
 0x4bc   :  { %v746_v7 = vpop.permute.xlu0 %745 }
 0x4bd   :  { %v732_v9 = vmul.f32 %v970_v58, %v731_v4  ;;  %766 = vmatpush.msra.mxu3 %v746_v7  ;;  %909 = vmatmul.msk.f32.vlgmr.msra.gmra.mxu0 %vm170_vm2, %v586_v5 }
 0x4be   :  { %914 = vmatmul.msk.f32.vlgmr.msra.gmra.mxu3 %vm170_vm2, %v743_v8 }
 0x4bf   :  { %v733_v12 = vadd.f32 %v970_v58, %v732_v9 }
 0x4c1   :  { %v737_v14 = vsel %vm736_vm7, %v970_v58, %v733_v12 }
 0x4c2   :  { %v742_v15 = vsel %vm739_vm8, %v741_v13, %v737_v14 }
 0x4c3   :  { %v744_v11 = vmul.f32 %v1277_v20, %v742_v15 }
 0x4c4   :  { %v772_v18 = vpop.permute.xlu0 %771 }
 0x4c5   :  { %792 = vmatpush.msrb.mxu0 %v772_v18 }
 0x4c6   :  { %915 = vmatmul.msk.f32.vlgmr.msrb.gmra.mxu0 %vm170_vm2, %v744_v11 }
 0x4c9   :  { %v610_v22 = vpop.f32.mrf.mxu3 }
 0x4ca   :  { %807 = vrot.lane.b32.xlu0 %v610_v22, %s1112_s28 }
 0x511   :  { %v800_v28 = vpop.permute.xlu2 %799 }
 0x512   :  { %v821_v60 = vsel %vm170_vm2, %v1256_v36, %v800_v28  ;;  %v938_v36 = vld [vmem:[%s1335_s6] ss:$0 sm:$0xff] }
 0x532   :  { %v478_v24 = vpop.f32.mrf.mxu0 }
 0x533   :  { %801 = vrot.lane.b32.xlu0 %v478_v24, %s1101_s10 }
 0x53a   :  { %v636_v25 = vpop.f32.mrf.mxu0 }
 0x53b   :  { %809 = vrot.lane.b32.xlu1 %v636_v25, %s1112_s28 }
 0x53c   :  { %v808_v29 = vpop.permute.xlu0 %807 }
 0x53d   :  { %v823_v30 = vsel %vm142_vm1, %v821_v60, %v808_v29 }
 0x541   :  { %v768_v26 = vpop.f32.mrf.mxu3 }
 0x542   :  { %815 = vrot.lane.b32.xlu2 %v768_v26, %s1113_s29 }
 0x543   :  { %v794_v20 = vpop.f32.mrf.mxu0 }
 0x54a   :  { %817 = vrot.lane.b32.xlu2 %v794_v20, %s1113_s29 }
 0x59c   :  { %v816_v31 = vpop.permute.xlu2 %815 }
 0x59d   :  { %v826_v32 = vsel %vm825_vm9, %v823_v30, %v816_v31 }
 0x59e   :  { %916 = vmatmul.msk.f32.vlgmr.msra.gmra.mxu1 %vm100_vm0, %v826_v32 }
 0x5a4   :  { %v818_v35 = vpop.permute.xlu2 %817 }
 0x5a5   :  { %v802_v33 = vpop.permute.xlu0 %801 }
 0x5a6   :  { %v822_v34 = vsel %vm170_vm2, %v1291_v19, %v802_v33 }
 0x5ad   :  { %v810_v17 = vpop.permute.xlu1 %809 }
 0x5ae   :  { %v824_v37 = vsel %vm142_vm1, %v822_v34, %v810_v17 }
 0x5af   :  { %v827_v38 = vsel %vm825_vm9, %v824_v37, %v818_v35 }
 0x5b0   :  { %917 = vmatmul.msk.f32.gmra.mxu1 %vm100_vm0, %v827_v38 }
 0x61b   :  { %v859_v39 = vpop.f32.mrf.mxu1 }
 0x61c   :  { %v860_v40 = vadd.f32 %v938_v36, %v859_v39 }
 0x61e   :  { %865 = vst [vmem:[#allocation10] sm:$0xff] %v860_v40 }
 0x62d   :  { %v862_v19 = vpop.f32.mrf.mxu1 }
 0x62e   :  { %v863_v41 = vadd.f32 %v938_v36, %v862_v19 }
 0x630   :  { %866 = vst [vmem:[#allocation10 + $0x8] sm:$0xff] %v863_v41 }
 0x631   :  { %879 = dma.vmem_to_hbm [thread:$0]  %s872_s12, 256, %s874_s1, [#allocation4], %s1100_s9, %s1100_s9, %s1101_s10  }
 0x632   :  { %1097 = dma.done.wait [#allocation4], 256  }
 0x633   :  { %1098 = vsyncadd [#allocation4], 4294967040 }
 0x634   :  { %884 = vsyncpa [#allocation3], 1 }
 0x635   :  { %885 = vsyncpa [#allocation6], 1 }
 0x636   :  { %886 = vsyncpa [#allocation9], 1 }
 0x637   :  { %887 = vsyncpa [#allocation4], 1 }

</bundles_post_ra>
